<compile_context>
chip_gen: v5e
topology: v5e:2x2
jax: 0.10.0
libtpu: 0.0.40
codegen_flags: <defaults>
</compile_context>

<pallas_src>
import math
import functools

import jax
import jax.numpy as jnp
from jax.experimental import pallas as pl
from jax.experimental.pallas import tpu as pltpu


def _gather_onehot_kernel(idx_ref, pe_ref, o_ref, *, pack):
    # idx_ref: (rows, pack) int32  -- idx + j*max_len for sub-position j
    # pe_ref : (pack*max_len, pack*d_model) f32, block-diagonal pe (VMEM-resident)
    # o_ref  : (rows, pack*d_model)
    rows = idx_ref.shape[0]
    k = pe_ref.shape[0]                      # pack * max_len
    idxs = idx_ref[...]                      # (rows, pack)
    col = jax.lax.broadcasted_iota(jnp.int32, (rows, k), 1)
    # Multi-hot selector: each of the `pack` adjusted indices falls in its own
    # max_len-wide segment of the contraction axis, so OR-ing compares is exact.
    hot = col == idxs[:, 0:1]
    for j in range(1, pack):
        hot = jnp.logical_or(hot, col == idxs[:, j:j + 1])
    onehot = hot.astype(jnp.float32)
    o_ref[...] = jnp.dot(onehot, pe_ref[...],
                         preferred_element_type=jnp.float32).astype(o_ref.dtype)


def positional_encoding_trans(pos, pe, max_len, *, block_rows=512):
    """p = pe[clip(round(pos * max_len), 0, max_len-1)]; out shape pos.shape + (d_model,)."""
    orig_dtype = pe.dtype
    d_model = pe.shape[-1]

    # index = torch.round(pos * self.max_len).long(); clip before the int cast
    # so out-of-domain pos can't index out of bounds (no VMEM bounds checks).
    idx = jnp.clip(jnp.round(pos.astype(jnp.float32) * max_len),
                   0, max_len - 1).astype(jnp.int32).reshape(-1)
    n = idx.shape[0]

    # Pack `pack` consecutive positions into one 128-lane output row when possible.
    if d_model < 128 and 128 % d_model == 0:
        pack = min(128 // d_model, 8)
    else:
        pack = 1

    # Row block: multiple of pack*8 so the (rows, lanes) blocks are tile-aligned.
    tn = max(pack * 8, (block_rows // (pack * 8)) * (pack * 8))
    n_pad = pl.cdiv(n, tn) * tn
    idx_padded = jnp.pad(idx, (0, n_pad - n))            # pad with 0 (safe, sliced off)

    # Adjusted indices: sub-position j of each pack-group selects from segment j.
    seg = (jnp.arange(n_pad, dtype=jnp.int32) % pack) * max_len
    idx_adj = (idx_padded + seg).reshape(n_pad // pack, pack)

    # Block-diagonal pe: (pack*max_len, pack*d_model); a multi-hot matmul then
    # yields `pack` gathered rows side by side in the lane dimension.
    pe_f32 = pe.astype(jnp.float32)
    if pack > 1:
        pe_big = jnp.zeros((pack * max_len, pack * d_model), jnp.float32)
        for j in range(pack):
            pe_big = pe_big.at[j * max_len:(j + 1) * max_len,
                               j * d_model:(j + 1) * d_model].set(pe_f32)
    else:
        pe_big = pe_f32

    rows_per_block = tn // pack
    out_cols = pack * d_model
    num_blocks = n_pad // tn

    kernel = functools.partial(_gather_onehot_kernel, pack=pack)

    out = pl.pallas_call(
        kernel,
        out_shape=jax.ShapeDtypeStruct((n_pad // pack, out_cols), jnp.float32),
        grid_spec=pltpu.PrefetchScalarGridSpec(
            num_scalar_prefetch=0,
            grid=(num_blocks,),
            in_specs=[
                # adjusted indices: one (rows_per_block, pack) block per step
                pl.BlockSpec((rows_per_block, pack), lambda i: (i, 0)),
                # pe table: full array, constant block -> stays resident in VMEM
                pl.BlockSpec((pack * max_len, out_cols), lambda i: (0, 0)),
            ],
            out_specs=pl.BlockSpec((rows_per_block, out_cols), lambda i: (i, 0)),
        ),
        compiler_params=pltpu.CompilerParams(
            dimension_semantics=("parallel",)),   # row blocks are independent
    )(idx_adj, pe_big)

    out = out.reshape(n_pad, d_model)[:n]
    # TODO(synk): for very large max_len (>~8k) a fori_loop of dynamic slices
    # would beat the one-hot matmul; not needed at these table sizes.
    return out.reshape(pos.shape + (d_model,)).astype(orig_dtype)


def make_pe(max_len, d_model):
    """Deterministic sinusoidal table, identical to the PyTorch __init__."""
    position = jnp.arange(max_len, dtype=jnp.float32)[:, None]
    div_term = jnp.exp(
        jnp.arange(0, d_model, 2, dtype=jnp.float32) * (-math.log(10000.0) / d_model)
    )
    pe = jnp.zeros((max_len, d_model), jnp.float32)
    pe = pe.at[:, 0::2].set(jnp.sin(position * div_term))
    pe = pe.at[:, 1::2].set(jnp.cos(position * div_term))
    return pe


if __name__ == "__main__":
    d_model = 32
    max_len = 64
    batch, seq = 2, 8

    pe = make_pe(max_len, d_model)

    key = jax.random.PRNGKey(0)
    # pos in [0, 0.95) so round(pos * max_len) is naturally in range; the
    # kernel additionally clips, matching the only safe PyTorch usage.
    pos = jax.random.uniform(key, (batch, seq), dtype=jnp.float32,
                             minval=0.0, maxval=0.95)

    out = positional_encoding_trans(pos, pe, max_len)
    out = jax.block_until_ready(out)

    # pure-JAX reference check of the gather semantics
    ref = pe[jnp.clip(jnp.round(pos * max_len), 0, max_len - 1).astype(jnp.int32)]
    assert out.shape == (batch, seq, d_model)
    assert jnp.allclose(out, ref), "mismatch vs reference gather"

    print("KERNEL_OK")
</pallas_src>

<mosaic_0001>
module attributes {stable_mosaic.version = 11 : i64} {
  func.func @_gather_onehot_kernel(%arg0: i32, %arg1: memref<128x4xi32, #tpu.memory_space<vmem>>, %arg2: memref<256x128xf32, #tpu.memory_space<vmem>>, %arg3: memref<128x128xf32, #tpu.memory_space<vmem>>) attributes {dimension_semantics = [#tpu.dimension_semantics<parallel>], iteration_bounds = array<i64: 1>, scalar_prefetch = 0 : i64, scratch_operands = 0 : i64, tpu.core_type = #tpu.core_type<tc>, window_params = [{transform_indices = @transform_0, window_bounds = array<i64: 128, 4>}, {pipeline_mode = #tpu.pipeline_mode<synchronous>, transform_indices = @transform_1, window_bounds = array<i64: 256, 128>}, {transform_indices = @transform_2, window_bounds = array<i64: 128, 128>}]} {
    %c0 = arith.constant 0 : index
    %c0_0 = arith.constant 0 : index
    %0 = vector.load %arg1[%c0, %c0_0] : memref<128x4xi32, #tpu.memory_space<vmem>>, vector<128x4xi32>
    %1 = tpu.iota {dimensions = array<i32: 1>} : vector<128x256xi32>
    %2 = vector.extract_strided_slice %0 {offsets = [0, 0], sizes = [128, 1], strides = [1, 1]} : vector<128x4xi32> to vector<128x1xi32>
    %3 = vector.broadcast %2 : vector<128x1xi32> to vector<128x256xi32>
    %4 = arith.cmpi eq, %1, %3 : vector<128x256xi32>
    %5 = vector.extract_strided_slice %0 {offsets = [0, 1], sizes = [128, 1], strides = [1, 1]} : vector<128x4xi32> to vector<128x1xi32>
    %6 = vector.broadcast %5 : vector<128x1xi32> to vector<128x256xi32>
    %7 = arith.cmpi eq, %1, %6 : vector<128x256xi32>
    %8 = arith.ori %4, %7 : vector<128x256xi1>
    %9 = vector.extract_strided_slice %0 {offsets = [0, 2], sizes = [128, 1], strides = [1, 1]} : vector<128x4xi32> to vector<128x1xi32>
    %10 = vector.broadcast %9 : vector<128x1xi32> to vector<128x256xi32>
    %11 = arith.cmpi eq, %1, %10 : vector<128x256xi32>
    %12 = arith.ori %8, %11 : vector<128x256xi1>
    %13 = vector.extract_strided_slice %0 {offsets = [0, 3], sizes = [128, 1], strides = [1, 1]} : vector<128x4xi32> to vector<128x1xi32>
    %14 = vector.broadcast %13 : vector<128x1xi32> to vector<128x256xi32>
    %15 = arith.cmpi eq, %1, %14 : vector<128x256xi32>
    %16 = arith.ori %12, %15 : vector<128x256xi1>
    %17 = arith.extui %16 : vector<128x256xi1> to vector<128x256xi32>
    %18 = arith.sitofp %17 : vector<128x256xi32> to vector<128x256xf32>
    %c0_1 = arith.constant 0 : index
    %c0_2 = arith.constant 0 : index
    %19 = vector.load %arg2[%c0_1, %c0_2] : memref<256x128xf32, #tpu.memory_space<vmem>>, vector<256x128xf32>
    %cst = arith.constant dense<0.000000e+00> : vector<128x128xf32>
    %20 = tpu.matmul %18, %19, %cst {dimension_numbers = #tpu.dot_dimension_numbers<[1], [0], [0], [1], [0, 0, 1, 1], [], []>} : vector<128x256xf32>, vector<256x128xf32>, vector<128x128xf32> -> vector<128x128xf32>
    %c0_3 = arith.constant 0 : index
    %c0_4 = arith.constant 0 : index
    %21 = vector.load %arg3[%c0_3, %c0_4] : memref<128x128xf32, #tpu.memory_space<vmem>>, vector<128x128xf32>
    tpu.vector_store %arg3[%c0_3, %c0_4], %20 {strides = array<i32>} : memref<128x128xf32, #tpu.memory_space<vmem>>, vector<128x128xf32>,
    return
  }
  func.func @transform_0(%arg0: i32) -> (i32, i32) {
    %c0_i32 = arith.constant 0 : i32
    %c0_i32_0 = arith.constant 0 : i32
    return %arg0, %c0_i32 : i32, i32
  }
  func.func @transform_1(%arg0: i32) -> (i32, i32) {
    %c0_i32 = arith.constant 0 : i32
    %c0_i32_0 = arith.constant 0 : i32
    %c0_i32_1 = arith.constant 0 : i32
    return %c0_i32, %c0_i32_0 : i32, i32
  }
  func.func @transform_2(%arg0: i32) -> (i32, i32) {
    %c0_i32 = arith.constant 0 : i32
    %c0_i32_0 = arith.constant 0 : i32
    return %arg0, %c0_i32 : i32, i32
  }
}

</mosaic_0001>

<bundles_post_ra>
// kernel: tpu_custom_call.1
= control target key start
LH: loop header
LB: loop body
LE: loop exit
PB: predicated region body
PF: predicated region fallthrough
CT: control target
= control target key end

     0   :  { %7 = vsyncpa [#allocation3], 0  ;;  %s1458_s0 = inlined_call_operand.vmem [shape: s32[128,4], index: 0, kind: input, shape index: {}]   ;;  %s1459_s1 = inlined_call_operand.hbm [shape: f32[256,128], index: 1, kind: input, shape index: {}]   ;;  %s1460_s2 = inlined_call_operand.hbm [shape: f32[128,128], index: 2, kind: output, shape index: {}]  }
   0x1   :  { %8 = vsyncpa [#allocation4], 0  ;;  %s15_s11 = sshll.u32 %s1459_s1, 4  ;;  %s906_s12 = smov [#allocation2]   ;;  %s16_s11 = int_to_ptr.hbm [resolvable:$true] %s15_s11 }
   0x2   :  { %s17_s13 = sshll.u32 %s906_s12, 4  ;;  %s907_s14 = smov 128   ;;  %s18_s13 = int_to_ptr.vmem [resolvable:$true] %s17_s13 }
   0x3   :  { %s908_s15 = smov 8  }
   0x4   :  { %23 = dma.hbm_to_vmem [thread:$0]  %s16_s11, 4096, %s18_s13, [#allocation3], %s907_s14, %s907_s14, %s908_s15  }
   0x5   :  { %902 = dma.done.wait [#allocation3], 4096  }
   0x6   :  { %903 = vsyncadd [#allocation3], 4294963200  ;;  %v909_v0 = vmov 0   ;;  %v939_v1 = vld [vmem:[%s1458_s0 + $0x20] sm:$0xff]  ;;  %v944_v2 = vld [vmem:[%s1458_s0 + $0x10] sm:$0xff]  ;;  %v910_v17 = vmov 1   ;;  %v44_v26 = vlaneseq }
   0x7   :  { %831 = vset.pattern.permute.xlu2 %v909_v0  ;;  %830 = vset.pattern.permute.xlu1 %v909_v0  ;;  %v28_v3 = vld [vmem:[%s1458_s0] sm:$0xff]  ;;  %v954_v4 = vld [vmem:[%s1458_s0 + $0x28] sm:$0xff]  ;;  %v959_v5 = vld [vmem:[%s1458_s0 + $0x18] sm:$0xff]  ;;  %v911_v18 = vmov 3   ;;  %v912_v19 = vmov 2   ;;  %v1461_v39 = vmov 0 }
   0x8   :  { %829 = vset.pattern.permute.xlu0 %v909_v0  ;;  %60 = vperm.xlu2 %831, %v939_v1   ;;  %v29_v6 = vld [vmem:[%s1458_s0 + $0x8] sm:$0xff]  ;;  %v36_v7 = vld [vmem:[%s1458_s0 + $0x40] sm:$0xff]  ;;  %v972_v8 = vld [vmem:[%s1458_s0 + $0x38] sm:$0xff]  ;;  %v1061_v30 = vand.u32 127, %v44_v26  ;;  %v1463_v40 = vmov 0  ;;  %v1465_v52 = vmov 0 }
   0x9   :  { %54 = vperm.xlu1 %830, %v944_v2   ;;  %48 = vperm.xlu0 %829, %v28_v3   ;;  %v977_v9 = vld [vmem:[%s1458_s0 + $0x30] sm:$0xff]  ;;  %v984_v10 = vld [vmem:[%s1458_s0 + $0x58] sm:$0xff]  ;;  %v37_v12 = vld [vmem:[%s1458_s0 + $0x48] sm:$0xff]  ;;  %v1467_v53 = vmov 0  ;;  %v1469_v63 = vmov 0  ;;  %s711_s23 = sshll.u32 %s1460_s2, 4  ;;  %s712_s23 = int_to_ptr.hbm [resolvable:$true] %s711_s23 }
   0xa   :  { %v38_v11 = vld [vmem:[%s1458_s0 + $0x50] sm:$0xff]  ;;  %v1001_v14 = vld [vmem:[%s1458_s0 + $0x68] sm:$0xff]  ;;  %v1006_v15 = vld [vmem:[%s1458_s0 + $0x60] sm:$0xff]  ;;  %v1068_v33 = vadd.s32 128, %v1061_v30 }
   0xb   :  { %v996_v13 = vld [vmem:[%s1458_s0 + $0x70] sm:$0xff]  ;;  %v1014_v16 = vld [vmem:[%s1458_s0 + $0x78] sm:$0xff]  ;;  %v540_v41 = vld [vmem:[#allocation2 + $0x68] sm:$0xff]  ;;  %s914_s0 = smov [#allocation5]  }
   0xc   :  { %v542_v31 = vld [vmem:[#allocation2 + $0x78] sm:$0xff]  ;;  %v541_v37 = vld [vmem:[#allocation2 + $0x70] sm:$0xff]  ;;  %v556_v42 = vld [vmem:[#allocation2 + $0xe8] sm:$0xff]  ;;  %s709_s20 = sshll.u32 %s914_s0, 4  ;;  %s710_s20 = int_to_ptr.vmem [resolvable:$true] %s709_s20 }
   0xd   :  { %v558_v32 = vld [vmem:[#allocation2 + $0xf8] sm:$0xff]  ;;  %788 = vmatpush.msra.mxu2 %v542_v31  ;;  %559 = vmatpush.msra.mxu0 %v542_v31  ;;  %v557_v38 = vld [vmem:[#allocation2 + $0xf0] sm:$0xff]  ;;  %v539_v43 = vld [vmem:[#allocation2 + $0x60] sm:$0xff] }
   0xe   :  { %804 = vmatpush.msra.mxu3 %v558_v32  ;;  %624 = vmatpush.msra.mxu1 %v558_v32  ;;  %v555_v44 = vld [vmem:[#allocation2 + $0xe0] sm:$0xff]  ;;  %v538_v45 = vld [vmem:[#allocation2 + $0x58] sm:$0xff]  ;;  %v537_v50 = vld [vmem:[#allocation2 + $0x50] sm:$0xff] }
   0xf   :  { %789 = vmatpush.msra.mxu2 %v541_v37  ;;  %560 = vmatpush.msra.mxu0 %v541_v37  ;;  %v554_v47 = vld [vmem:[#allocation2 + $0xd8] sm:$0xff]  ;;  %v553_v51 = vld [vmem:[#allocation2 + $0xd0] sm:$0xff]  ;;  %v536_v54 = vld [vmem:[#allocation2 + $0x48] sm:$0xff] }
  0x10   :  { %63 = vperm.xlu2 %831, %v954_v4   ;;  %805 = vmatpush.msra.mxu3 %v557_v38  ;;  %v552_v55 = vld [vmem:[#allocation2 + $0xc8] sm:$0xff]  ;;  %v535_v56 = vld [vmem:[#allocation2 + $0x40] sm:$0xff]  ;;  %v534_v59 = vld [vmem:[#allocation2 + $0x38] sm:$0xff] }
  0x11   :  { %57 = vperm.xlu1 %830, %v959_v5   ;;  %51 = vperm.xlu0 %829, %v29_v6   ;;  %v551_v57 = vld [vmem:[#allocation2 + $0xc0] sm:$0xff]  ;;  %v550_v62 = vld [vmem:[#allocation2 + $0xb8] sm:$0xff]  ;;  %v533_v0 = vld [vmem:[#allocation2 + $0x30] sm:$0xff] }
  0x12   :  { %625 = vmatpush.msra.mxu1 %v557_v38  ;;  %790 = vmatpush.msra.mxu2 %v540_v41  ;;  %v528_v26 = vld [vmem:[#allocation2 + $0x8] sm:$0xff]  ;;  %v543_v37 = vld [vmem:[#allocation2 + $0x80] sm:$0xff]  ;;  %v1475_v38 = vmov 0 }
  0x13   :  { %806 = vmatpush.msra.mxu3 %v556_v42  ;;  %561 = vmatpush.msra.mxu0 %v540_v41 }
  0x14   :  { %791 = vmatpush.msra.mxu2 %v539_v43  ;;  %626 = vmatpush.msra.mxu1 %v556_v42 }
  0x15   :  { %807 = vmatpush.msra.mxu3 %v555_v44  ;;  %562 = vmatpush.msra.mxu0 %v539_v43  ;;  %v1477_v43 = vmov 0 }
  0x16   :  { %792 = vmatpush.msra.mxu2 %v538_v45  ;;  %627 = vmatpush.msra.mxu1 %v555_v44 }
  0x17   :  { %808 = vmatpush.msra.mxu3 %v554_v47  ;;  %563 = vmatpush.msra.mxu0 %v538_v45 }
  0x18   :  { %72 = vperm.xlu2 %831, %v36_v7   ;;  %793 = vmatpush.msra.mxu2 %v537_v50 }
  0x19   :  { %69 = vperm.xlu1 %830, %v972_v8   ;;  %66 = vperm.xlu0 %829, %v977_v9  }
  0x1a   :  { %809 = vmatpush.msra.mxu3 %v553_v51  ;;  %794 = vmatpush.msra.mxu2 %v536_v54 }
  0x1b   :  { %628 = vmatpush.msra.mxu1 %v554_v47  ;;  %564 = vmatpush.msra.mxu0 %v537_v50 }
  0x1c   :  { %810 = vmatpush.msra.mxu3 %v552_v55  ;;  %795 = vmatpush.msra.mxu2 %v535_v56 }
  0x1d   :  { %629 = vmatpush.msra.mxu1 %v553_v51  ;;  %565 = vmatpush.msra.mxu0 %v536_v54 }
  0x1e   :  { %811 = vmatpush.msra.mxu3 %v551_v57  ;;  %796 = vmatpush.msra.mxu2 %v534_v59 }
  0x1f   :  { %630 = vmatpush.msra.mxu1 %v552_v55  ;;  %566 = vmatpush.msra.mxu0 %v535_v56 }
  0x20   :  { %81 = vperm.xlu2 %831, %v984_v10   ;;  %812 = vmatpush.msra.mxu3 %v550_v62 }
  0x21   :  { %78 = vperm.xlu1 %830, %v38_v11   ;;  %75 = vperm.xlu0 %829, %v37_v12  }
  0x22   :  { %797 = vmatpush.msra.mxu2 %v533_v0  ;;  %631 = vmatpush.msra.mxu1 %v551_v57 }
  0x23   :  { %567 = vmatpush.msra.mxu0 %v534_v59 }
  0x24   :  { %632 = vmatpush.msra.mxu1 %v550_v62 }
  0x25   :  { %568 = vmatpush.msra.mxu0 %v533_v0 }
  0x28   :  { %90 = vperm.xlu2 %831, %v996_v13  }
  0x29   :  { %87 = vperm.xlu1 %830, %v1001_v14   ;;  %84 = vperm.xlu0 %829, %v1006_v15  }
  0x30   :  { %833 = vset.pattern.permute.xlu2 %v910_v17 }
  0x31   :  { %832 = vset.pattern.permute.xlu1 %v910_v17  ;;  %93 = vperm.xlu0 %829, %v1014_v16  }
  0x32   :  { %131 = vperm.xlu2 %833, %v29_v6   ;;  %128 = vperm.xlu1 %832, %v28_v3  }
  0x39   :  { %836 = vset.pattern.permute.xlu0 %v911_v18 }
  0x3a   :  { %140 = vperm.xlu2 %833, %v939_v1   ;;  %137 = vperm.xlu1 %832, %v959_v5  }
  0x3b   :  { %379 = vperm.xlu0 %836, %v37_v12  }
  0x42   :  { %146 = vperm.xlu2 %833, %v977_v9   ;;  %143 = vperm.xlu1 %832, %v954_v4  }
  0x43   :  { %382 = vperm.xlu0 %836, %v38_v11  }
  0x4a   :  { %155 = vperm.xlu2 %833, %v37_v12   ;;  %152 = vperm.xlu1 %832, %v36_v7  }
  0x4b   :  { %358 = vperm.xlu0 %836, %v944_v2  }
  0x52   :  { %835 = vset.pattern.permute.xlu2 %v912_v19  ;;  %834 = vset.pattern.permute.xlu1 %v911_v18 }
  0x53   :  { %843 = vset.pattern.permute.xlu0 %v912_v19  ;;  %240 = vperm.xlu2 %835, %v28_v3  }
  0x54   :  { %376 = vperm.xlu1 %834, %v36_v7   ;;  %264 = vperm.xlu0 %843, %v36_v7   ;;  %v531_v7 = vld [vmem:[#allocation2 + $0x20] sm:$0xff] }
  0x5b   :  { %267 = vperm.xlu2 %835, %v37_v12  }
  0x5c   :  { %352 = vperm.xlu1 %834, %v28_v3   ;;  %249 = vperm.xlu0 %843, %v959_v5   ;;  %v532_v3 = vld [vmem:[#allocation2 + $0x28] sm:$0xff] }
  0x5d   :  { %798 = vmatpush.msra.mxu2 %v532_v3  ;;  %569 = vmatpush.msra.mxu0 %v532_v3 }
  0x5f   :  { %799 = vmatpush.msra.mxu2 %v531_v7  ;;  %570 = vmatpush.msra.mxu0 %v531_v7 }
  0x62   :  { %v1029_v20 = vpop.permute.xlu2 %60 }
  0x63   :  { %838 = vset.pattern.permute.xlu2 %v910_v17  ;;  %vm103_vm6 = vcmp.eq.s32.totalorder %v1061_v30, %v1029_v20  ;;  %vm104_vm9 = vcmp.eq.s32.totalorder %v1068_v33, %v1029_v20  ;;  %v529_v20 = vld [vmem:[#allocation2 + $0x10] sm:$0xff] }
  0x64   :  { %837 = vset.pattern.permute.xlu1 %v912_v19  ;;  %252 = vperm.xlu0 %843, %v939_v1  }
  0x65   :  { %158 = vperm.xlu2 %838, %v38_v11   ;;  %243 = vperm.xlu1 %837, %v29_v6  }
  0x6a   :  { %v1034_v21 = vpop.permute.xlu2 %63 }
  0x6c   :  { %279 = vperm.xlu0 %843, %v1001_v14  }
  0x6d   :  { %840 = vset.pattern.permute.xlu2 %v912_v19  ;;  %839 = vset.pattern.permute.xlu1 %v911_v18 }
  0x6e   :  { %270 = vperm.xlu2 %840, %v38_v11   ;;  %355 = vperm.xlu1 %839, %v29_v6  }
  0x72   :  { %v1039_v22 = vpop.permute.xlu2 %72 }
  0x74   :  { %848 = vset.pattern.permute.xlu0 %v910_v17 }
  0x75   :  { %134 = vperm.xlu0 %848, %v944_v2  }
  0x76   :  { %842 = vset.pattern.permute.xlu2 %v910_v17  ;;  %841 = vset.pattern.permute.xlu1 %v912_v19 }
  0x77   :  { %161 = vperm.xlu2 %842, %v984_v10   ;;  %246 = vperm.xlu1 %841, %v944_v2   ;;  %v549_v2 = vld [vmem:[#allocation2 + $0xb0] sm:$0xff] }
  0x78   :  { %813 = vmatpush.msra.mxu3 %v549_v2  ;;  %633 = vmatpush.msra.mxu1 %v549_v2 }
  0x7a   :  { %v1047_v23 = vpop.permute.xlu2 %81 }
  0x7b   :  { %v1049_v24 = vpop.permute.xlu1 %54  ;;  %v1051_v25 = vpop.permute.xlu0 %48 }
  0x7d   :  { %149 = vperm.xlu0 %848, %v972_v8  }
  0x7f   :  { %844 = vset.pattern.permute.xlu2 %v911_v18  ;;  %273 = vperm.xlu1 %841, %v984_v10  }
  0x80   :  { %385 = vperm.xlu2 %844, %v984_v10   ;;  %v547_v10 = vld [vmem:[#allocation2 + $0xa0] sm:$0xff] }
  0x82   :  { %v1057_v27 = vpop.permute.xlu2 %90 }
  0x83   :  { %v1059_v28 = vpop.permute.xlu1 %57  ;;  %v52_v29 = vpop.permute.xlu0 %51 }
  0x84   :  { %vm97_vm0 = vcmp.eq.s32.totalorder %v1061_v30, %v52_v29  ;;  %vm98_vm1 = vcmp.eq.s32.totalorder %v1068_v33, %v52_v29  ;;  %v544_v29 = vld [vmem:[#allocation2 + $0x88] sm:$0xff] }
  0x85   :  { %170 = vperm.xlu0 %848, %v996_v13  }
  0x87   :  { %845 = vset.pattern.permute.xlu1 %v910_v17 }
  0x88   :  { %361 = vperm.xlu2 %844, %v959_v5   ;;  %164 = vperm.xlu1 %845, %v1006_v15   ;;  %v548_v5 = vld [vmem:[#allocation2 + $0xa8] sm:$0xff] }
  0x89   :  { %814 = vmatpush.msra.mxu3 %v548_v5  ;;  %634 = vmatpush.msra.mxu1 %v548_v5 }
  0x8b   :  { %v1071_v34 = vpop.permute.xlu1 %69  ;;  %v1074_v35 = vpop.permute.xlu0 %66  ;;  %815 = vmatpush.msra.mxu3 %v547_v10  ;;  %635 = vmatpush.msra.mxu1 %v547_v10 }
  0x8c   :  { %v132_v36 = vpop.permute.xlu2 %131  ;;  %vm107_vm12 = vcmp.eq.s32.totalorder %v1061_v30, %v1074_v35  ;;  %vm108_vm13 = vcmp.eq.s32.totalorder %v1068_v33, %v1074_v35  ;;  %v527_v35 = vld [vmem:[#allocation2] sm:$0xff] }
  0x8d   :  { %vm177_vm2 = vcmp.eq.s32.totalorder %v1061_v30, %v132_v36  ;;  %vm178_vm3 = vcmp.eq.s32.totalorder %v1068_v33, %v132_v36  ;;  %173 = vperm.xlu0 %848, %v1014_v16  }
  0x8e   :  { %vm1078_vm4 = vmor %vm97_vm0, %vm177_vm2  ;;  %vm101_vm2 = vcmp.eq.s32.totalorder %v1061_v30, %v1059_v28 }
  0x8f   :  { %v1462_v39 = vsel %vm1078_vm4, 4294967295, %v1461_v39  ;;  %vm1083_vm5 = vmor %vm98_vm1, %vm178_vm3 }
  0x90   :  { %v1464_v40 = vsel %vm1083_vm5, 4294967295, %v1463_v40  ;;  %388 = vperm.xlu2 %844, %v1006_v15   ;;  %846 = vset.pattern.permute.xlu1 %v912_v19 }
  0x91   :  { %276 = vperm.xlu1 %846, %v1006_v15   ;;  %v530_v15 = vld [vmem:[#allocation2 + $0x18] sm:$0xff] }
  0x92   :  { %800 = vmatpush.msra.mxu2 %v530_v15  ;;  %571 = vmatpush.msra.mxu0 %v530_v15 }
  0x93   :  { %v1090_v46 = vpop.permute.xlu1 %78  ;;  %v1092_v48 = vpop.permute.xlu0 %75 }
  0x94   :  { %v141_v49 = vpop.permute.xlu2 %140  ;;  %801 = vmatpush.msra.mxu2 %v529_v20  ;;  %572 = vmatpush.msra.mxu0 %v529_v20 }
  0x95   :  { %vm183_vm7 = vcmp.eq.s32.totalorder %v1061_v30, %v141_v49  ;;  %vm184_vm8 = vcmp.eq.s32.totalorder %v1068_v33, %v141_v49  ;;  %851 = vset.pattern.permute.xlu0 %v911_v18 }
  0x96   :  { %vm1100_vm10 = vmor %vm103_vm6, %vm183_vm7  ;;  %397 = vperm.xlu0 %851, %v1014_v16   ;;  %802 = vmatpush.msra.mxu2 %v528_v26  ;;  %vm102_vm7 = vcmp.eq.s32.totalorder %v1068_v33, %v1059_v28 }
  0x97   :  { %v1466_v52 = vsel %vm1100_vm10, 4294967295, %v1465_v52  ;;  %vm1105_vm11 = vmor %vm104_vm9, %vm184_vm8  ;;  %573 = vmatpush.msra.mxu0 %v528_v26 }
  0x98   :  { %v1468_v53 = vsel %vm1105_vm11, 4294967295, %v1467_v53  ;;  %364 = vperm.xlu2 %844, %v939_v1   ;;  %v1471_v1 = vmov 0  ;;  %803 = vmatpush.msra.mxu2 %v527_v35 }
  0x99   :  { %847 = vset.pattern.permute.xlu1 %v910_v17  ;;  %v546_v17 = vld [vmem:[#allocation2 + $0x98] sm:$0xff]  ;;  %574 = vmatpush.msra.mxu0 %v527_v35 }
  0x9a   :  { %167 = vperm.xlu1 %847, %v1001_v14   ;;  %816 = vmatpush.msra.mxu3 %v546_v17 }
  0x9b   :  { %v1115_v58 = vpop.permute.xlu1 %87  ;;  %v1119_v60 = vpop.permute.xlu0 %84  ;;  %636 = vmatpush.msra.mxu1 %v546_v17 }
  0x9c   :  { %v147_v61 = vpop.permute.xlu2 %146 }
  0x9d   :  { %vm187_vm14 = vcmp.eq.s32.totalorder %v1061_v30, %v147_v61  ;;  %vm188_vm15 = vcmp.eq.s32.totalorder %v1068_v33, %v147_v61 }
  0x9e   :  { %vm1123_vm0 = vmor %vm107_vm12, %vm187_vm14  ;;  %vm105_vm12 = vcmp.eq.s32.totalorder %v1061_v30, %v1034_v21 }
  0x9f   :  { %v1470_v63 = vsel %vm1123_vm0, 4294967295, %v1469_v63  ;;  %vm1127_vm1 = vmor %vm108_vm13, %vm188_vm15  ;;  %vm106_vm15 = vcmp.eq.s32.totalorder %v1068_v33, %v1034_v21 }
  0xa0   :  { %v1472_v1 = vsel %vm1127_vm1, 4294967295, %v1471_v1  ;;  %850 = vset.pattern.permute.xlu2 %v912_v19  ;;  %vm111_vm1 = vcmp.eq.s32.totalorder %v1061_v30, %v1039_v22 }
  0xa1   :  { %255 = vperm.xlu2 %850, %v954_v4  }
  0xa2   :  { %849 = vset.pattern.permute.xlu1 %v911_v18 }
  0xa3   :  { %391 = vperm.xlu1 %849, %v1001_v14   ;;  %v1137_v11 = vpop.permute.xlu0 %93  ;;  %v545_v14 = vld [vmem:[#allocation2 + $0x90] sm:$0xff] }
  0xa4   :  { %v1135_v6 = vpop.permute.xlu2 %155  ;;  %v1139_v12 = vpop.permute.xlu1 %128  ;;  %817 = vmatpush.msra.mxu3 %v545_v14  ;;  %637 = vmatpush.msra.mxu1 %v545_v14 }
  0xa6   :  { %818 = vmatpush.msra.mxu3 %v544_v29  ;;  %638 = vmatpush.msra.mxu1 %v544_v29 }
  0xa8   :  { %819 = vmatpush.msra.mxu3 %v543_v37  ;;  %639 = vmatpush.msra.mxu1 %v543_v37 }
  0xa9   :  { %282 = vperm.xlu2 %850, %v996_v13  }
  0xab   :  { %367 = vperm.xlu1 %849, %v954_v4   ;;  %v1473_v4 = vmov 0 }
  0xac   :  { %v138_v31 = vpop.permute.xlu1 %137 }
  0xad   :  { %v1143_v32 = vpop.permute.xlu0 %379  ;;  %vm181_vm3 = vcmp.eq.s32.totalorder %v1061_v30, %v138_v31  ;;  %vm182_vm6 = vcmp.eq.s32.totalorder %v1068_v33, %v138_v31  ;;  %v1149_v36 = vpop.permute.xlu2 %240 }
  0xae   :  { %vm1153_vm8 = vmor %vm101_vm2, %vm181_vm3 }
  0xaf   :  { %v1474_v4 = vsel %vm1153_vm8, 4294967295, %v1473_v4  ;;  %vm1157_vm9 = vmor %vm102_vm7, %vm182_vm6  ;;  %vm193_vm6 = vcmp.eq.s32.totalorder %v1061_v30, %v1135_v6  ;;  %vm175_vm7 = vcmp.eq.s32.totalorder %v1061_v30, %v1139_v12 }
  0xb0   :  { %v1476_v38 = vsel %vm1157_vm9, 4294967295, %v1475_v38 }
  0xb1   :  { %258 = vperm.xlu2 %850, %v977_v9  }
  0xb3   :  { %394 = vperm.xlu1 %849, %v996_v13   ;;  %v1479_v13 = vmov 0 }
  0xb4   :  { %v144_v28 = vpop.permute.xlu1 %143 }
  0xb5   :  { %v1163_v41 = vpop.permute.xlu0 %382  ;;  %vm185_vm13 = vcmp.eq.s32.totalorder %v1061_v30, %v144_v28  ;;  %vm186_vm14 = vcmp.eq.s32.totalorder %v1068_v33, %v144_v28  ;;  %v268_v42 = vpop.permute.xlu2 %267 }
  0xb6   :  { %vm1171_vm2 = vmor %vm105_vm12, %vm185_vm13  ;;  %vm194_vm12 = vcmp.eq.s32.totalorder %v1068_v33, %v1135_v6  ;;  %vm176_vm13 = vcmp.eq.s32.totalorder %v1068_v33, %v1139_v12 }
  0xb7   :  { %v1478_v43 = vsel %vm1171_vm2, 4294967295, %v1477_v43  ;;  %vm1175_vm3 = vmor %vm106_vm15, %vm186_vm14  ;;  %vm95_vm14 = vcmp.eq.s32.totalorder %v1061_v30, %v1051_v25  ;;  %vm113_vm15 = vcmp.eq.s32.totalorder %v1061_v30, %v1092_v48  ;;  %vm114_vm2 = vcmp.eq.s32.totalorder %v1068_v33, %v1092_v48 }
  0xb8   :  { %v1480_v13 = vsel %vm1175_vm3, 4294967295, %v1479_v13  ;;  %vm96_vm3 = vcmp.eq.s32.totalorder %v1068_v33, %v1051_v25  ;;  %vm1207_vm11 = vmor %vm113_vm15, %vm193_vm6  ;;  %vm112_vm6 = vcmp.eq.s32.totalorder %v1068_v33, %v1039_v22  ;;  %vm1487_vm15 = vcmp.eq.s32.totalorder %v1061_v30, %v1149_v36 }
  0xb9   :  { %285 = vperm.xlu2 %850, %v1014_v16   ;;  %vm207_vm10 = vmor %vm95_vm14, %vm175_vm7  ;;  %v1483_v16 = vmov 0  ;;  %v913_v22 = vmov 1.0  }
  0xba   :  { %vm1215_vm8 = vmor %vm114_vm2, %vm194_vm12 }
  0xbb   :  { %370 = vperm.xlu1 %849, %v977_v9   ;;  %v1481_v9 = vmov 0  ;;  %v1484_v16 = vsel %vm1215_vm8, 4294967295, %v1483_v16  ;;  %vm1219_vm5 = vmor %vm96_vm3, %vm176_vm13 }
  0xbc   :  { %v153_v44 = vpop.permute.xlu1 %152  ;;  %v1482_v9 = vsel %vm1207_vm11, 4294967295, %v1481_v9  ;;  %vm1229_vm4 = vmor %vm207_vm10, %vm1487_vm15  ;;  %vm305_vm11 = vcmp.eq.s32.totalorder %v1061_v30, %v268_v42 }
  0xbd   :  { %v1181_v45 = vpop.permute.xlu0 %358  ;;  %vm191_vm0 = vcmp.eq.s32.totalorder %v1061_v30, %v153_v44  ;;  %vm192_vm9 = vcmp.eq.s32.totalorder %v1068_v33, %v153_v44 }
  0xbe   :  { %vm223_vm7 = vmor %vm111_vm1, %vm191_vm0  ;;  %vm288_vm0 = vcmp.eq.s32.totalorder %v1068_v33, %v1149_v36 }
  0xbf   :  { %v1183_v47 = vpop.permute.xlu2 %158  ;;  %vm224_vm2 = vmor %vm112_vm6, %vm192_vm9  ;;  %vm306_vm9 = vcmp.eq.s32.totalorder %v1068_v33, %v268_v42 }
  0xc0   :  { %vm320_vm15 = vmor %vm1219_vm5, %vm288_vm0  ;;  %vm418_vm5 = vcmp.eq.s32.totalorder %v1068_v33, %v1143_v32 }
  0xc1   :  { %853 = vset.pattern.permute.xlu2 %v911_v18 }
  0xc2   :  { %373 = vperm.xlu2 %853, %v972_v8  }
  0xc3   :  { %852 = vset.pattern.permute.xlu1 %v912_v19 }
  0xc4   :  { %261 = vperm.xlu1 %852, %v972_v8  }
  0xc6   :  { %v377_v19 = vpop.permute.xlu1 %376  ;;  %v265_v21 = vpop.permute.xlu0 %264 }
  0xc7   :  { %vm415_vm14 = vcmp.eq.s32.totalorder %v1061_v30, %v377_v19  ;;  %vm303_vm3 = vcmp.eq.s32.totalorder %v1061_v30, %v265_v21  ;;  %vm304_vm12 = vcmp.eq.s32.totalorder %v1068_v33, %v265_v21  ;;  %vm416_vm13 = vcmp.eq.s32.totalorder %v1068_v33, %v377_v19 }
  0xc8   :  { %v271_v25 = vpop.permute.xlu2 %270  ;;  %vm335_vm8 = vmor %vm223_vm7, %vm303_vm3  ;;  %vm1490_vm7 = vnez %v1482_v9 }
  0xc9   :  { %vm447_vm1 = vmor %vm335_vm8, %vm415_vm14  ;;  %vm417_vm8 = vcmp.eq.s32.totalorder %v1061_v30, %v1143_v32 }
  0xca   :  { %764 = vmatmul.msk.f32.vlgmr.msra.gmra.mxu2 %vm447_vm1, %v913_v22  ;;  %vm336_vm10 = vmor %vm224_vm2, %vm304_vm12  ;;  %vm1491_vm2 = vnez %v1484_v16 }
  0xcb   :  { %vm448_vm6 = vmor %vm336_vm10, %vm416_vm13  ;;  %vm195_vm10 = vcmp.eq.s32.totalorder %v1061_v30, %v1183_v47 }
  0xcc   :  { %780 = vmatmul.msk.f32.vlgmr.msra.gmra.mxu3 %vm448_vm6, %v913_v22  ;;  %vm337_vm3 = vmor %vm1490_vm7, %vm305_vm11  ;;  %vm196_vm7 = vcmp.eq.s32.totalorder %v1068_v33, %v1183_v47 }
  0xcd   :  { %vm338_vm12 = vmor %vm1491_vm2, %vm306_vm9  ;;  %vm307_vm9 = vcmp.eq.s32.totalorder %v1061_v30, %v271_v25 }
  0xce   :  { %v353_v48 = vpop.permute.xlu1 %352  ;;  %v1250_v49 = vpop.permute.xlu0 %249  ;;  %vm449_vm0 = vmor %vm337_vm3, %vm417_vm8  ;;  %vm116_vm3 = vcmp.eq.s32.totalorder %v1068_v33, %v1090_v46  ;;  %vm419_vm8 = vcmp.eq.s32.totalorder %v1061_v30, %v1163_v41 }
  0xcf   :  { %vm399_vm14 = vcmp.eq.s32.totalorder %v1061_v30, %v353_v48  ;;  %vm400_vm1 = vcmp.eq.s32.totalorder %v1068_v33, %v353_v48  ;;  %vm450_vm6 = vmor %vm338_vm12, %vm418_vm5  ;;  %vm420_vm12 = vcmp.eq.s32.totalorder %v1068_v33, %v1163_v41 }
  0xd0   :  { %vm431_vm13 = vmor %vm1229_vm4, %vm399_vm14  ;;  %vm115_vm4 = vcmp.eq.s32.totalorder %v1061_v30, %v1090_v46  ;;  %vm308_vm14 = vcmp.eq.s32.totalorder %v1068_v33, %v271_v25 }
  0xd1   :  { %v162_v50 = vpop.permute.xlu2 %161  ;;  %756 = vmatmul.msk.f32.vlgmr.msra.gmra.mxu0 %vm431_vm13, %v913_v22  ;;  %vm432_vm11 = vmor %vm320_vm15, %vm400_vm1 }
  0xd2   :  { %772 = vmatmul.msk.f32.vlgmr.msra.gmra.mxu1 %vm432_vm11, %v913_v22  ;;  %765 = vmatmul.msk.f32.gmra.mxu2 %vm449_vm0, %v913_v22  ;;  %vm227_vm15 = vmor %vm115_vm4, %vm195_vm10 }
  0xd3   :  { %vm339_vm1 = vmor %vm227_vm15, %vm307_vm9  ;;  %vm1492_vm9 = vnez %v1462_v39  ;;  %vm1493_vm15 = vnez %v1464_v40  ;;  %v1494_v40 = vmov 0 }
  0xd4   :  { %781 = vmatmul.msk.f32.gmra.mxu3 %vm450_vm6, %v913_v22  ;;  %vm228_vm2 = vmor %vm116_vm3, %vm196_vm7 }
  0xd5   :  { %vm340_vm13 = vmor %vm228_vm2, %vm308_vm14  ;;  %vm99_vm2 = vcmp.eq.s32.totalorder %v1061_v30, %v1049_v24 }
  0xd6   :  { %v1274_v51 = vpop.permute.xlu0 %252  ;;  %vm451_vm5 = vmor %vm339_vm1, %vm419_vm8  ;;  %vm197_vm1 = vcmp.eq.s32.totalorder %v1061_v30, %v162_v50 }
  0xd7   :  { %v244_v54 = vpop.permute.xlu1 %243  ;;  %vm452_vm11 = vmor %vm340_vm13, %vm420_vm12 }
  0xd8   :  { %vm289_vm0 = vcmp.eq.s32.totalorder %v1061_v30, %v244_v54  ;;  %vm290_vm10 = vcmp.eq.s32.totalorder %v1068_v33, %v244_v54 }
  0xd9   :  { %vm321_vm6 = vmor %vm1492_vm9, %vm289_vm0  ;;  %vm198_vm0 = vcmp.eq.s32.totalorder %v1068_v33, %v162_v50 }
  0xda   :  { %v386_v55 = vpop.permute.xlu2 %385  ;;  %766 = vmatmul.msk.f32.gmra.mxu2 %vm451_vm5, %v913_v22  ;;  %vm322_vm14 = vmor %vm1493_vm15, %vm290_vm10  ;;  %vm117_vm5 = vcmp.eq.s32.totalorder %v1061_v30, %v1047_v23  ;;  %vm118_vm15 = vcmp.eq.s32.totalorder %v1068_v33, %v1047_v23 }
  0xdb   :  { %vm1302_vm9 = vmor %vm117_vm5, %vm197_vm1 }
  0xdc   :  { %782 = vmatmul.msk.f32.gmra.mxu3 %vm452_vm11, %v913_v22  ;;  %vm100_vm11 = vcmp.eq.s32.totalorder %v1068_v33, %v1049_v24  ;;  %v1495_v40 = vsel %vm1302_vm9, 4294967295, %v1494_v40  ;;  %v1496_v24 = vmov 0 }
  0xde   :  { %v1282_v46 = vpop.permute.xlu0 %279 }
  0xe0   :  { %v356_v56 = vpop.permute.xlu1 %355 }
  0xe1   :  { %vm401_vm4 = vcmp.eq.s32.totalorder %v1061_v30, %v356_v56  ;;  %vm402_vm7 = vcmp.eq.s32.totalorder %v1068_v33, %v356_v56 }
  0xe2   :  { %v362_v57 = vpop.permute.xlu2 %361  ;;  %vm433_vm3 = vmor %vm321_vm6, %vm401_vm4 }
  0xe3   :  { %757 = vmatmul.msk.f32.gmra.mxu0 %vm433_vm3, %v913_v22  ;;  %vm434_vm8 = vmor %vm322_vm14, %vm402_vm7  ;;  %vm403_vm14 = vcmp.eq.s32.totalorder %v1061_v30, %v1181_v45 }
  0xe4   :  { %773 = vmatmul.msk.f32.gmra.mxu1 %vm434_vm8, %v913_v22  ;;  %vm293_vm8 = vcmp.eq.s32.totalorder %v1061_v30, %v1250_v49 }
  0xe7   :  { %v135_v59 = vpop.permute.xlu0 %134 }
  0xe8   :  { %vm179_vm12 = vcmp.eq.s32.totalorder %v1061_v30, %v135_v59  ;;  %vm180_vm13 = vcmp.eq.s32.totalorder %v1068_v33, %v135_v59 }
  0xe9   :  { %vm211_vm10 = vmor %vm99_vm2, %vm179_vm12  ;;  %v247_v39 = vpop.permute.xlu1 %246  ;;  %vm404_vm12 = vcmp.eq.s32.totalorder %v1068_v33, %v1181_v45 }
  0xea   :  { %vm212_vm6 = vmor %vm100_vm11, %vm180_vm13  ;;  %vm291_vm4 = vcmp.eq.s32.totalorder %v1061_v30, %v247_v39  ;;  %vm292_vm7 = vcmp.eq.s32.totalorder %v1068_v33, %v247_v39  ;;  %v389_v61 = vpop.permute.xlu2 %388  ;;  %vm294_vm13 = vcmp.eq.s32.totalorder %v1068_v33, %v1250_v49  ;;  %vm405_vm11 = vcmp.eq.s32.totalorder %v1061_v30, %v362_v57 }
  0xeb   :  { %vm323_vm3 = vmor %vm211_vm10, %vm291_vm4  ;;  %vm406_vm4 = vcmp.eq.s32.totalorder %v1068_v33, %v362_v57 }
  0xec   :  { %vm1314_vm2 = vmor %vm118_vm15, %vm198_vm0  ;;  %vm1498_vm0 = vnez %v1474_v4 }
  0xed   :  { %v1497_v24 = vsel %vm1314_vm2, 4294967295, %v1496_v24  ;;  %vm435_vm1 = vmor %vm323_vm3, %vm403_vm14  ;;  %vm1499_vm14 = vnez %v1476_v38  ;;  %vm421_vm2 = vcmp.eq.s32.totalorder %v1061_v30, %v386_v55 }
  0xee   :  { %758 = vmatmul.msk.f32.gmra.mxu0 %vm435_vm1, %v913_v22  ;;  %vm324_vm5 = vmor %vm212_vm6, %vm292_vm7 }
  0xef   :  { %vm436_vm10 = vmor %vm324_vm5, %vm404_vm12  ;;  %vm422_vm12 = vcmp.eq.s32.totalorder %v1068_v33, %v386_v55  ;;  %vm1500_vm5 = vnez %v1495_v40  ;;  %v1365_v2 = vpop.permute.xlu0 %149 }
  0xf0   :  { %774 = vmatmul.msk.f32.gmra.mxu1 %vm436_vm10, %v913_v22  ;;  %vm325_vm15 = vmor %vm1498_vm0, %vm293_vm8  ;;  %vm1501_vm8 = vnez %v1497_v24 }
  0xf1   :  { %vm326_vm3 = vmor %vm1499_vm14, %vm294_vm13  ;;  %v274_v23 = vpop.permute.xlu1 %273  ;;  %vm1502_vm14 = vnez %v1466_v52 }
  0xf2   :  { %vm437_vm9 = vmor %vm325_vm15, %vm405_vm11  ;;  %vm309_vm1 = vcmp.eq.s32.totalorder %v1061_v30, %v274_v23  ;;  %vm310_vm6 = vcmp.eq.s32.totalorder %v1068_v33, %v274_v23  ;;  %v365_v62 = vpop.permute.xlu2 %364 }
  0xf3   :  { %vm438_vm7 = vmor %vm326_vm3, %vm406_vm4  ;;  %vm295_vm4 = vcmp.eq.s32.totalorder %v1061_v30, %v1274_v51  ;;  %vm407_vm15 = vcmp.eq.s32.totalorder %v1061_v30, %v365_v62 }
  0xf4   :  { %vm341_vm10 = vmor %vm1500_vm5, %vm309_vm1 }
  0xf5   :  { %vm453_vm0 = vmor %vm341_vm10, %vm421_vm2  ;;  %vm296_vm2 = vcmp.eq.s32.totalorder %v1068_v33, %v1274_v51 }
  0xf6   :  { %759 = vmatmul.msk.f32.gmra.mxu0 %vm437_vm9, %v913_v22  ;;  %767 = vmatmul.msk.f32.gmra.mxu2 %vm453_vm0, %v913_v22  ;;  %vm342_vm13 = vmor %vm1501_vm8, %vm310_vm6  ;;  %vm408_vm9 = vcmp.eq.s32.totalorder %v1068_v33, %v365_v62  ;;  %vm1503_vm6 = vnez %v1468_v53  ;;  %vm119_vm0 = vcmp.eq.s32.totalorder %v1061_v30, %v1119_v60  ;;  %vm120_vm8 = vcmp.eq.s32.totalorder %v1068_v33, %v1119_v60 }
  0xf7   :  { %vm454_vm11 = vmor %vm342_vm13, %vm422_vm12  ;;  %v171_v5 = vpop.permute.xlu0 %170 }
  0xf8   :  { %775 = vmatmul.msk.f32.gmra.mxu1 %vm438_vm7, %v913_v22  ;;  %783 = vmatmul.msk.f32.gmra.mxu3 %vm454_vm11, %v913_v22  ;;  %vm327_vm3 = vmor %vm1502_vm14, %vm295_vm4 }
  0xf9   :  { %vm439_vm1 = vmor %vm327_vm3, %vm407_vm15  ;;  %vm424_vm3 = vcmp.eq.s32.totalorder %v1068_v33, %v389_v61 }
  0xfa   :  { %v165_v0 = vpop.permute.xlu1 %164  ;;  %vm328_vm7 = vmor %vm1503_vm6, %vm296_vm2  ;;  %vm423_vm2 = vcmp.eq.s32.totalorder %v1061_v30, %v389_v61 }
  0xfb   :  { %vm440_vm12 = vmor %vm328_vm7, %vm408_vm9  ;;  %vm199_vm5 = vcmp.eq.s32.totalorder %v1061_v30, %v165_v0  ;;  %vm200_vm10 = vcmp.eq.s32.totalorder %v1068_v33, %v165_v0  ;;  %v256_v53 = vpop.permute.xlu2 %255 }
  0xfc   :  { %vm231_vm13 = vmor %vm119_vm0, %vm199_vm5  ;;  %vm121_vm5 = vcmp.eq.s32.totalorder %v1061_v30, %v1115_v58 }
  0xfd   :  { %vm232_vm11 = vmor %vm120_vm8, %vm200_vm10  ;;  %vm122_vm10 = vcmp.eq.s32.totalorder %v1068_v33, %v1115_v58 }
  0xfe   :  { %760 = vmatmul.msk.f32.gmra.mxu0 %vm439_vm1, %v913_v22 }
  0xff   :  { %v174_v7 = vpop.permute.xlu0 %173 }
 0x100   :  { %776 = vmatmul.msk.f32.gmra.mxu1 %vm440_vm12, %v913_v22 }
 0x103   :  { %v277_v52 = vpop.permute.xlu1 %276  ;;  %v283_v3 = vpop.permute.xlu2 %282 }
 0x104   :  { %vm311_vm4 = vcmp.eq.s32.totalorder %v1061_v30, %v277_v52  ;;  %vm312_vm15 = vcmp.eq.s32.totalorder %v1068_v33, %v277_v52 }
 0x105   :  { %vm343_vm9 = vmor %vm231_vm13, %vm311_vm4  ;;  %vm313_vm13 = vcmp.eq.s32.totalorder %v1061_v30, %v1282_v46 }
 0x106   :  { %vm455_vm14 = vmor %vm343_vm9, %vm423_vm2 }
 0x107   :  { %768 = vmatmul.msk.f32.gmra.mxu2 %vm455_vm14, %v913_v22  ;;  %vm344_vm1 = vmor %vm232_vm11, %vm312_vm15  ;;  %vm314_vm11 = vcmp.eq.s32.totalorder %v1068_v33, %v1282_v46 }
 0x108   :  { %vm456_vm6 = vmor %vm344_vm1, %vm424_vm3  ;;  %vm297_vm1 = vcmp.eq.s32.totalorder %v1061_v30, %v256_v53 }
 0x109   :  { %784 = vmatmul.msk.f32.gmra.mxu3 %vm456_vm6, %v913_v22  ;;  %vm298_vm6 = vcmp.eq.s32.totalorder %v1068_v33, %v256_v53 }
 0x10b   :  { %v259_v58 = vpop.permute.xlu2 %258 }
 0x10c   :  { %v168_v60 = vpop.permute.xlu1 %167 }
 0x10d   :  { %vm201_vm7 = vcmp.eq.s32.totalorder %v1061_v30, %v168_v60  ;;  %vm202_vm12 = vcmp.eq.s32.totalorder %v1068_v33, %v168_v60 }
 0x10e   :  { %vm233_vm0 = vmor %vm121_vm5, %vm201_vm7  ;;  %vm1504_vm7 = vnez %v1478_v43  ;;  %vm203_vm5 = vcmp.eq.s32.totalorder %v1061_v30, %v171_v5 }
 0x10f   :  { %vm234_vm8 = vmor %vm122_vm10, %vm202_vm12 }
 0x110   :  { %vm345_vm2 = vmor %vm233_vm0, %vm313_vm13 }
 0x111   :  { %vm346_vm9 = vmor %vm234_vm8, %vm314_vm11  ;;  %vm1505_vm8 = vnez %v1480_v13  ;;  %vm204_vm11 = vcmp.eq.s32.totalorder %v1068_v33, %v171_v5 }
 0x112   :  { %vm329_vm12 = vmor %vm1504_vm7, %vm297_vm1  ;;  %vm206_vm1 = vcmp.eq.s32.totalorder %v1068_v33, %v174_v7 }
 0x113   :  { %vm330_vm13 = vmor %vm1505_vm8, %vm298_vm6  ;;  %vm125_vm6 = vcmp.eq.s32.totalorder %v1061_v30, %v1137_v11  ;;  %v286_v15 = vpop.permute.xlu2 %285 }
 0x115   :  { %v392_v6 = vpop.permute.xlu1 %391 }
 0x116   :  { %vm425_vm4 = vcmp.eq.s32.totalorder %v1061_v30, %v392_v6  ;;  %vm426_vm15 = vcmp.eq.s32.totalorder %v1068_v33, %v392_v6 }
 0x117   :  { %vm457_vm14 = vmor %vm345_vm2, %vm425_vm4  ;;  %vm205_vm2 = vcmp.eq.s32.totalorder %v1061_v30, %v174_v7 }
 0x118   :  { %769 = vmatmul.msk.f32.gmra.mxu2 %vm457_vm14, %v913_v22  ;;  %vm458_vm3 = vmor %vm346_vm9, %vm426_vm15  ;;  %vm123_vm15 = vcmp.eq.s32.totalorder %v1061_v30, %v1057_v27  ;;  %vm124_vm14 = vcmp.eq.s32.totalorder %v1068_v33, %v1057_v27  ;;  %v1508_v27 = vmov 0 }
 0x119   :  { %785 = vmatmul.msk.f32.gmra.mxu3 %vm458_vm3, %v913_v22  ;;  %vm235_vm3 = vmor %vm123_vm15, %vm203_vm5 }
 0x11a   :  { %vm236_vm7 = vmor %vm124_vm14, %vm204_vm11  ;;  %vm299_vm11 = vcmp.eq.s32.totalorder %v1061_v30, %v259_v58 }
 0x11b   :  { %vm1405_vm8 = vmor %vm125_vm6, %vm205_vm2  ;;  %vm317_vm2 = vcmp.eq.s32.totalorder %v1061_v30, %v286_v15  ;;  %vm318_vm6 = vcmp.eq.s32.totalorder %v1068_v33, %v286_v15 }
 0x11d   :  { %v368_v10 = vpop.permute.xlu1 %367 }
 0x11e   :  { %vm409_vm10 = vcmp.eq.s32.totalorder %v1061_v30, %v368_v10  ;;  %vm410_vm0 = vcmp.eq.s32.totalorder %v1068_v33, %v368_v10 }
 0x11f   :  { %vm441_vm4 = vmor %vm329_vm12, %vm409_vm10  ;;  %vm315_vm12 = vcmp.eq.s32.totalorder %v1061_v30, %v283_v3  ;;  %vm126_vm10 = vcmp.eq.s32.totalorder %v1068_v33, %v1137_v11  ;;  %v398_v11 = vpop.permute.xlu0 %397 }
 0x120   :  { %761 = vmatmul.msk.f32.gmra.mxu0 %vm441_vm4, %v913_v22  ;;  %vm442_vm9 = vmor %vm330_vm13, %vm410_vm0  ;;  %vm316_vm0 = vcmp.eq.s32.totalorder %v1068_v33, %v283_v3 }
 0x121   :  { %777 = vmatmul.msk.f32.gmra.mxu1 %vm442_vm9, %v913_v22  ;;  %vm1410_vm5 = vmor %vm126_vm10, %vm206_vm1  ;;  %vm300_vm10 = vcmp.eq.s32.totalorder %v1068_v33, %v259_v58 }
 0x122   :  { %v1509_v27 = vsel %vm1410_vm5, 4294967295, %v1508_v27  ;;  %vm347_vm13 = vmor %vm235_vm3, %vm315_vm12  ;;  %vm1510_vm3 = vnez %v1470_v63  ;;  %v374_v63 = vpop.permute.xlu2 %373 }
 0x123   :  { %vm348_vm9 = vmor %vm236_vm7, %vm316_vm0  ;;  %vm429_vm7 = vcmp.eq.s32.totalorder %v1061_v30, %v398_v11  ;;  %vm1511_vm0 = vnez %v1509_v27 }
 0x124   :  { %vm331_vm12 = vmor %vm1510_vm3, %vm299_vm11 }
 0x125   :  { %v395_v17 = vpop.permute.xlu1 %394  ;;  %vm349_vm5 = vmor %vm1405_vm8, %vm317_vm2 }
 0x126   :  { %vm427_vm4 = vcmp.eq.s32.totalorder %v1061_v30, %v395_v17  ;;  %vm428_vm15 = vcmp.eq.s32.totalorder %v1068_v33, %v395_v17 }
 0x127   :  { %vm459_vm14 = vmor %vm347_vm13, %vm427_vm4  ;;  %vm430_vm4 = vcmp.eq.s32.totalorder %v1068_v33, %v398_v11 }
 0x128   :  { %770 = vmatmul.msk.f32.gmra.mxu2 %vm459_vm14, %v913_v22  ;;  %vm460_vm1 = vmor %vm348_vm9, %vm428_vm15  ;;  %vm1512_vm14 = vnez %v1472_v1 }
 0x129   :  { %786 = vmatmul.msk.f32.gmra.mxu3 %vm460_vm1, %v913_v22  ;;  %vm350_vm13 = vmor %vm1511_vm0, %vm318_vm6  ;;  %vm189_vm6 = vcmp.eq.s32.totalorder %v1061_v30, %v1365_v2 }
 0x12a   :  { %vm332_vm15 = vmor %vm1512_vm14, %vm300_vm10  ;;  %vm109_vm10 = vcmp.eq.s32.totalorder %v1061_v30, %v1071_v34  ;;  %vm413_vm14 = vcmp.eq.s32.totalorder %v1061_v30, %v374_v63 }
 0x12b   :  { %vm461_vm9 = vmor %vm349_vm5, %vm429_vm7  ;;  %vm190_vm5 = vcmp.eq.s32.totalorder %v1068_v33, %v1365_v2 }
 0x12c   :  { %vm462_vm1 = vmor %vm350_vm13, %vm430_vm4 }
 0x12d   :  { %v371_v20 = vpop.permute.xlu1 %370  ;;  %vm221_vm7 = vmor %vm109_vm10, %vm189_vm6 }
 0x12e   :  { %vm411_vm3 = vcmp.eq.s32.totalorder %v1061_v30, %v371_v20  ;;  %vm412_vm11 = vcmp.eq.s32.totalorder %v1068_v33, %v371_v20 }
 0x12f   :  { %vm443_vm2 = vmor %vm331_vm12, %vm411_vm3  ;;  %vm110_vm12 = vcmp.eq.s32.totalorder %v1068_v33, %v1071_v34 }
 0x130   :  { %762 = vmatmul.msk.f32.gmra.mxu0 %vm443_vm2, %v913_v22  ;;  %771 = vmatmul.msk.f32.gmra.mxu2 %vm461_vm9, %v913_v22  ;;  %vm444_vm8 = vmor %vm332_vm15, %vm412_vm11  ;;  %vm414_vm9 = vcmp.eq.s32.totalorder %v1068_v33, %v374_v63 }
 0x131   :  { %778 = vmatmul.msk.f32.gmra.mxu1 %vm444_vm8, %v913_v22  ;;  %787 = vmatmul.msk.f32.gmra.mxu3 %vm462_vm1, %v913_v22  ;;  %vm222_vm0 = vmor %vm110_vm12, %vm190_vm5 }
 0x136   :  { %v262_v1 = vpop.permute.xlu1 %261 }
 0x137   :  { %vm301_vm13 = vcmp.eq.s32.totalorder %v1061_v30, %v262_v1  ;;  %vm302_vm4 = vcmp.eq.s32.totalorder %v1068_v33, %v262_v1 }
 0x138   :  { %vm333_vm15 = vmor %vm221_vm7, %vm301_vm13 }
 0x139   :  { %vm334_vm1 = vmor %vm222_vm0, %vm302_vm4 }
 0x13a   :  { %vm445_vm3 = vmor %vm333_vm15, %vm413_vm14 }
 0x13b   :  { %vm446_vm11 = vmor %vm334_vm1, %vm414_vm9  ;;  %763 = vmatmul.msk.f32.gmra.mxu0 %vm445_vm3, %v913_v22 }
 0x13c   :  { %779 = vmatmul.msk.f32.gmra.mxu1 %vm446_vm11, %v913_v22 }
 0x14d   :  { %v600_v34 = vpop.f32.mrf.mxu2 }
 0x14e   :  { %v576_v14 = vpop.f32.mrf.mxu0 }
 0x14f   :  { %v641_v26 = vpop.f32.mrf.mxu1  ;;  %v665_v29 = vpop.f32.mrf.mxu3 }
 0x150   :  { %v642_v31 = vadd.f32 %v641_v26, %v576_v14  ;;  %v666_v32 = vadd.f32 %v665_v29, %v600_v34 }
 0x152   :  { %689 = vst [vmem:[#allocation5] sm:$0xff] %v642_v31 }
 0x153   :  { %697 = vst [vmem:[#allocation5 + $0x40] sm:$0xff] %v666_v32 }
 0x155   :  { %v603_v35 = vpop.f32.mrf.mxu2 }
 0x157   :  { %v668_v30 = vpop.f32.mrf.mxu3 }
 0x158   :  { %v669_v36 = vadd.f32 %v668_v30, %v603_v35 }
 0x15a   :  { %698 = vst [vmem:[#allocation5 + $0x48] sm:$0xff] %v669_v36 }
 0x15d   :  { %v606_v33 = vpop.f32.mrf.mxu2 }
 0x15f   :  { %v671_v37 = vpop.f32.mrf.mxu3 }
 0x160   :  { %v672_v4 = vadd.f32 %v671_v37, %v606_v33  ;;  %v579_v38 = vpop.f32.mrf.mxu0 }
 0x161   :  { %v644_v28 = vpop.f32.mrf.mxu1 }
 0x162   :  { %699 = vst [vmem:[#allocation5 + $0x50] sm:$0xff] %v672_v4  ;;  %v645_v41 = vadd.f32 %v644_v28, %v579_v38 }
 0x164   :  { %690 = vst [vmem:[#allocation5 + $0x8] sm:$0xff] %v645_v41 }
 0x16b   :  { %v582_v42 = vpop.f32.mrf.mxu0 }
 0x16d   :  { %v647_v43 = vpop.f32.mrf.mxu1 }
 0x16e   :  { %v648_v13 = vadd.f32 %v647_v43, %v582_v42 }
 0x170   :  { %691 = vst [vmem:[#allocation5 + $0x10] sm:$0xff] %v648_v13 }
 0x173   :  { %v585_v44 = vpop.f32.mrf.mxu0 }
 0x175   :  { %v650_v45 = vpop.f32.mrf.mxu1 }
 0x176   :  { %v651_v47 = vadd.f32 %v650_v45, %v585_v44 }
 0x178   :  { %692 = vst [vmem:[#allocation5 + $0x18] sm:$0xff] %v651_v47 }
 0x179   :  { %v609_v9 = vpop.f32.mrf.mxu2 }
 0x17b   :  { %v674_v16 = vpop.f32.mrf.mxu3  ;;  %v588_v18 = vpop.f32.mrf.mxu0 }
 0x17c   :  { %v675_v19 = vadd.f32 %v674_v16, %v609_v9 }
 0x17d   :  { %v653_v21 = vpop.f32.mrf.mxu1 }
 0x17e   :  { %700 = vst [vmem:[#allocation5 + $0x58] sm:$0xff] %v675_v19  ;;  %v654_v8 = vadd.f32 %v653_v21, %v588_v18 }
 0x180   :  { %693 = vst [vmem:[#allocation5 + $0x20] sm:$0xff] %v654_v8 }
 0x18a   :  { %v612_v25 = vpop.f32.mrf.mxu2 }
 0x18c   :  { %v677_v22 = vpop.f32.mrf.mxu3 }
 0x18d   :  { %v678_v48 = vadd.f32 %v677_v22, %v612_v25 }
 0x18f   :  { %701 = vst [vmem:[#allocation5 + $0x60] sm:$0xff] %v678_v48 }
 0x19b   :  { %v615_v49 = vpop.f32.mrf.mxu2 }
 0x19c   :  { %v680_v50 = vpop.f32.mrf.mxu3 }
 0x19d   :  { %v591_v51 = vpop.f32.mrf.mxu0  ;;  %v681_v54 = vadd.f32 %v680_v50, %v615_v49 }
 0x19e   :  { %v656_v55 = vpop.f32.mrf.mxu1 }
 0x19f   :  { %v657_v46 = vadd.f32 %v656_v55, %v591_v51  ;;  %702 = vst [vmem:[#allocation5 + $0x68] sm:$0xff] %v681_v54 }
 0x1a1   :  { %694 = vst [vmem:[#allocation5 + $0x28] sm:$0xff] %v657_v46 }
 0x1ab   :  { %v618_v56 = vpop.f32.mrf.mxu2 }
 0x1ac   :  { %v683_v57 = vpop.f32.mrf.mxu3 }
 0x1ad   :  { %v684_v59 = vadd.f32 %v683_v57, %v618_v56  ;;  %v594_v39 = vpop.f32.mrf.mxu0 }
 0x1ae   :  { %v659_v40 = vpop.f32.mrf.mxu1 }
 0x1af   :  { %703 = vst [vmem:[#allocation5 + $0x70] sm:$0xff] %v684_v59  ;;  %v660_v24 = vadd.f32 %v659_v40, %v594_v39 }
 0x1b1   :  { %695 = vst [vmem:[#allocation5 + $0x30] sm:$0xff] %v660_v24 }
 0x1b3   :  { %v621_v61 = vpop.f32.mrf.mxu2 }
 0x1b4   :  { %v686_v23 = vpop.f32.mrf.mxu3 }
 0x1b5   :  { %v687_v62 = vadd.f32 %v686_v23, %v621_v61 }
 0x1b7   :  { %704 = vst [vmem:[#allocation5 + $0x78] sm:$0xff] %v687_v62 }
 0x1b8   :  { %v597_v0 = vpop.f32.mrf.mxu0 }
 0x1b9   :  { %v662_v52 = vpop.f32.mrf.mxu1 }
 0x1ba   :  { %v663_v53 = vadd.f32 %v662_v52, %v597_v0 }
 0x1bc   :  { %696 = vst [vmem:[#allocation5 + $0x38] sm:$0xff] %v663_v53 }
 0x1bd   :  { %717 = dma.vmem_to_hbm [thread:$0]  %s710_s20, 2048, %s712_s23, [#allocation4], %s907_s14, %s907_s14, %s908_s15  }
 0x1be   :  { %904 = dma.done.wait [#allocation4], 2048  }
 0x1bf   :  { %905 = vsyncadd [#allocation4], 4294965248 }
 0x1c0   :  { %722 = vsyncpa [#allocation3], 1 }
 0x1c1   :  { %723 = vsyncpa [#allocation4], 1 }

</bundles_post_ra>
